<compile_context>
chip_gen: v5e
topology: v5e:2x2
jax: 0.10.0
libtpu: 0.0.40
codegen_flags: <defaults>
</compile_context>

<pallas_src>
import functools

import jax
import jax.numpy as jnp
from jax import lax
from jax.experimental import pallas as pl
from jax.experimental.pallas import tpu as pltpu


def _round_up(x, m):
    return ((x + m - 1) // m) * m


_HALO = 16      # top halo rows per batch slab (16-row aligned for bf16 tiles)
_ROW_CAP = 128  # max frame rows processed per grid step (vreg-pressure guard)


def _cnn_stack_kernel(x_ref, w_ref, b_ref, o_ref, st0, st1, *,
                      num_layers, K, pad, halo, f_pad, lengths, c_in):
    """Runs the whole Conv1d+ReLU stack for TB batch elements.

    x_ref : (TB, L0, c_in) f32                input slab
    w_ref : (num_layers, K, C_pad, C_pad) bf16 tap-major, zero-padded weights
    b_ref : (num_layers, 1, C_pad) f32         zero-padded biases
    o_ref : (TB, L_final, C_pad) f32           lane-dense output slab
    st0/st1: (TB*f_pad, C_pad) bf16 VMEM       ping-pong activation frames
    """
    TB = x_ref.shape[0]
    n_rows, c_pad = st0.shape
    fdt = st0.dtype
    bufs = (st0, st1)
    L0 = lengths[0]

    # ---- per-step frame init (halo-only where possible) -------------------
    # st0 gets one full zero: its staging rows must have lanes [c_in, c_pad)
    # zeroed anyway, and the halo rows come for free with the same store.
    st0[...] = jnp.zeros(st0.shape, fdt)
    if num_layers >= 2:
        # st1: only the halo rows matter -- layer 0 fully overwrites the
        # interior rows [halo, halo + lengths[1]) with full lane width.
        l1 = lengths[1]
        tail = f_pad - halo - l1
        for t in range(TB):
            base = t * f_pad
            st1[base:base + halo, :] = jnp.zeros((halo, c_pad), fdt)
            if tail > 0:
                st1[base + halo + l1:base + f_pad, :] = jnp.zeros(
                    (tail, c_pad), fdt)

    # ---- stage the input (16-row-aligned offset; pad lanes stay zero) -----
    for t in range(TB):
        r0 = t * f_pad + halo
        st0[r0:r0 + L0, 0:c_in] = x_ref[t].astype(fdt)

    # ---- conv stack --------------------------------------------------------
    for li in range(num_layers):            # static -> fully unrolled
        src = bufs[li % 2]
        dst = bufs[(li + 1) % 2]
        l_out = lengths[li + 1]

        src_all = src[...]                   # single aligned full-frame load
        acc = None
        for k in range(K):                   # K small & static -> unrolled
            # Aligned full-frame MXU matmul; shift the f32 result on the XLU.
            y = jnp.dot(src_all, w_ref[li, k],
                        preferred_element_type=jnp.float32)
            s = (pad - k) % n_rows
            if s:
                # Wrapped rows land only in halo rows that are never read.
                y = pltpu.roll(y, shift=s, axis=0)
            acc = y if acc is None else acc + y

        bias = b_ref[li]                     # (1, c_pad) f32, hoisted
        for t in range(TB):
            r0 = t * f_pad + halo            # 16-aligned slice start
            blk = jnp.maximum(acc[r0:r0 + l_out, :] + bias, 0.0)
            if li == num_layers - 1:
                # Lane-dense store of the full 128-wide channel slab.
                o_ref[t] = blk.astype(o_ref.dtype)
            else:
                dst[r0:r0 + l_out, :] = blk.astype(fdt)
                # Even kernel_size shrinks l_out layer by layer; clear the
                # stale tail this frame still holds from its previous writer.
                prev_valid = lengths[li - 1] if li >= 1 else l_out
                stale = prev_valid - l_out
                if stale > 0:
                    dst[r0 + l_out:r0 + prev_valid, :] = jnp.zeros(
                        (stale, c_pad), fdt)


def cnn_stack_pallas(x, w_packed, b_packed, *, kernel_size, num_layers,
                     num_filters, frame_dtype=jnp.bfloat16):
    """Fused Conv1d+ReLU stack.

    x        : (B, L, C_in) float32
    w_packed : (num_layers, K, C_pad, C_pad) tap-major, zero-padded weights
    b_packed : (num_layers, 1, C_pad)        zero-padded biases (f32)
    returns  : (B, L_final, num_filters) float32
    """
    B, L, c_in = x.shape
    K = kernel_size
    pad = (K - 1) // 2
    assert pad <= _HALO, "kernel_size too large for the fixed 16-row halo"

    lengths = [L]
    for _ in range(num_layers):
        lengths.append(lengths[-1] + 2 * pad - K + 1)
    l_final = lengths[-1]

    c_pad = w_packed.shape[-1]
    assert c_in <= c_pad and num_filters <= c_pad

    # Per-element slab rows: top halo + data + roll-wrap margin, 16-aligned.
    f_pad = _round_up(_HALO + L + K, 16)

    # Batch-block: as many whole slabs per grid step as fit the row cap.
    # TODO(synk): for very long sequences (f_pad > _ROW_CAP) additionally
    # row-chunk the per-layer matmul inside a slab to bound vreg pressure.
    tb = min(B, max(1, _ROW_CAP // f_pad))
    b_pad = _round_up(B, tb)
    if b_pad != B:
        x = jnp.pad(x, ((0, b_pad - B), (0, 0), (0, 0)))

    kernel = functools.partial(
        _cnn_stack_kernel, num_layers=num_layers, K=K, pad=pad, halo=_HALO,
        f_pad=f_pad, lengths=tuple(lengths), c_in=c_in)

    # Generation-aware VMEM budget (v7x has only 64 MiB physical): compute the
    # actual need with headroom and cap at 48 MiB.
    fbytes = jnp.dtype(frame_dtype).itemsize
    est = (2 * tb * f_pad * c_pad * fbytes                      # frames
           + 2 * num_layers * K * c_pad * c_pad * fbytes        # weights (x2 buf)
           + 2 * num_layers * 8 * c_pad * 4                     # bias tiles
           + 2 * tb * _round_up(L, 8) * _round_up(c_in, 128) * 4   # x blocks
           + 2 * tb * _round_up(l_final, 8) * c_pad * 4)        # out blocks
    vmem_limit = int(min(48 * 1024 * 1024,
                         max(32 * 1024 * 1024, est + 8 * 1024 * 1024)))

    out = pl.pallas_call(
        kernel,
        out_shape=jax.ShapeDtypeStruct((b_pad, l_final, c_pad), jnp.float32),
        grid_spec=pltpu.PrefetchScalarGridSpec(
            num_scalar_prefetch=0,
            grid=(b_pad // tb,),  # tb batch elements per grid step
            in_specs=[
                pl.BlockSpec((tb, L, c_in), lambda bb: (bb, 0, 0)),
                pl.BlockSpec((num_layers, K, c_pad, c_pad),
                             lambda bb: (0, 0, 0, 0)),
                pl.BlockSpec((num_layers, 1, c_pad), lambda bb: (0, 0, 0)),
            ],
            out_specs=pl.BlockSpec((tb, l_final, c_pad),
                                   lambda bb: (bb, 0, 0)),
            scratch_shapes=[
                pltpu.VMEM((tb * f_pad, c_pad), frame_dtype),
                pltpu.VMEM((tb * f_pad, c_pad), frame_dtype),
            ],
        ),
        compiler_params=pltpu.CompilerParams(
            # 'parallel' lets the batch axis shard across the 2 TensorCores on
            # v7x; each grid step is fully self-contained (no cross-step
            # scratch assumptions), so core splitting is safe.
            dimension_semantics=("parallel",),
            vmem_limit_bytes=vmem_limit,
        ),
    )(x, w_packed, b_packed)

    # Kernel output is lane-dense (c_pad wide); slice real channels here.
    return out[:B, :, :num_filters]


class CNNPallas:
    """Pallas port of CNNInformer.CNN: stack of Conv1d(same-pad) + ReLU.

    forward(x_enc) with x_enc of shape (B, L, input_size) ->
    (B, L_final, num_filters), matching the PyTorch permute/conv/permute
    semantics (L_final == L for odd kernel_size).
    """

    def __init__(self, input_size, num_filters, kernel_size, num_layers, key,
                 compute_dtype=jnp.bfloat16):
        self.input_size = input_size
        self.num_filters = num_filters
        self.kernel_size = kernel_size
        self.num_layers = num_layers
        self.compute_dtype = compute_dtype

        self.params = []
        for i in range(num_layers):
            in_ch = input_size if i == 0 else num_filters
            key, kw, kb = jax.random.split(key, 3)
            # Deterministic init mimicking PyTorch's uniform(-bound, bound)
            fan_in = in_ch * kernel_size
            bound = 1.0 / (fan_in ** 0.5)
            w = jax.random.uniform(
                kw, (num_filters, in_ch, kernel_size),
                minval=-bound, maxval=bound, dtype=jnp.float32)
            b = jax.random.uniform(
                kb, (num_filters,), minval=-bound, maxval=bound,
                dtype=jnp.float32)
            self.params.append((w, b))

        # Pre-pack ONCE (off the dispatch path): tap-major (K, C_in, C_out)
        # bf16 weights, channel dims zero-padded to a lane-dense multiple of
        # 128, all layers stacked.  Biases stay f32 (added to the f32 acc).
        c_pad = _round_up(max(input_size, num_filters), 128)
        w_packed = jnp.zeros((num_layers, kernel_size, c_pad, c_pad),
                             compute_dtype)
        b_packed = jnp.zeros((num_layers, 1, c_pad), jnp.float32)
        for i, (w, b) in enumerate(self.params):
            in_ch = w.shape[1]
            w_kio = jnp.transpose(w, (2, 1, 0)).astype(compute_dtype)
            w_packed = w_packed.at[i, :, :in_ch, :num_filters].set(w_kio)
            b_packed = b_packed.at[i, 0, :num_filters].set(b)
        self.w_packed = w_packed
        self.b_packed = b_packed

    def __call__(self, x_enc):
        return cnn_stack_pallas(
            x_enc, self.w_packed, self.b_packed,
            kernel_size=self.kernel_size,
            num_layers=self.num_layers,
            num_filters=self.num_filters,
            frame_dtype=self.compute_dtype)


def _reference_forward_f32(x_enc, params, kernel_size):
    """Pure-JAX f32 reference matching the PyTorch Conv1d + ReLU stack."""
    pad = (kernel_size - 1) // 2
    out = jnp.transpose(x_enc, (0, 2, 1))  # (B, C, L) like PyTorch NCW
    for (w, b) in params:
        out = lax.conv_general_dilated(
            out, w, window_strides=(1,), padding=[(pad, pad)],
            dimension_numbers=("NCH", "OIH", "NCH"))
        out = out + b[None, :, None]
        out = jnp.maximum(out, 0.0)
    return jnp.transpose(out, (0, 2, 1))


def _reference_forward_mirrored(x_enc, params, kernel_size, compute_dtype):
    """Reference with the same rounding points as the kernel (bf16 operands,
    f32 accumulation, f32 bias/ReLU, bf16 layer boundaries)."""
    pad = (kernel_size - 1) // 2
    out = x_enc
    for (w, b) in params:
        w_t = jnp.transpose(w, (2, 1, 0)).astype(compute_dtype)  # (K,Cin,Cout)
        xin = out.astype(compute_dtype)
        xp = jnp.pad(xin, ((0, 0), (pad, pad), (0, 0)))
        l_out = out.shape[1] + 2 * pad - kernel_size + 1
        acc = None
        for k in range(kernel_size):
            c = jnp.einsum("blc,co->blo", xp[:, k:k + l_out, :], w_t[k],
                           preferred_element_type=jnp.float32)
            acc = c if acc is None else acc + c
        out = jnp.maximum(acc + b[None, None, :], 0.0)
    return out


if __name__ == "__main__":
    # Small shapes consistent with the module's forward
    B = 2          # batch_size
    L = 16         # sequence length
    input_size = 8
    num_filters = 32
    kernel_size = 3
    num_layers = 2

    key = jax.random.PRNGKey(0)
    key, kx, kp = jax.random.split(key, 3)
    x_enc = jax.random.normal(kx, (B, L, input_size), dtype=jnp.float32)

    model = CNNPallas(input_size, num_filters, kernel_size, num_layers, kp)

    out = jax.block_until_ready(model(x_enc))
    assert out.shape == (B, L, num_filters), out.shape

    # Strict check against a reference with identical rounding points.
    ref_m = jax.block_until_ready(_reference_forward_mirrored(
        x_enc, model.params, kernel_size, model.compute_dtype))
    err_m = float(jnp.max(jnp.abs(out - ref_m)))
    assert jnp.allclose(out, ref_m, atol=5e-3, rtol=5e-3), err_m

    # Loose sanity check against the full-f32 PyTorch-equivalent reference
    # (bf16 operand quantization dominates the difference here).
    ref_f = jax.block_until_ready(
        _reference_forward_f32(x_enc, model.params, kernel_size))
    err_f = float(jnp.max(jnp.abs(out - ref_f)))
    assert jnp.allclose(out, ref_f, atol=1e-1, rtol=1e-1), err_f

    print("KERNEL_OK")
</pallas_src>

<mosaic_0001>
module attributes {stable_mosaic.version = 11 : i64} {
  func.func @_cnn_stack_kernel(%arg0: i32, %arg1: memref<2x16x8xf32, #tpu.memory_space<vmem>>, %arg2: memref<2x3x128x128xbf16, #tpu.memory_space<vmem>>, %arg3: memref<2x1x128xf32, #tpu.memory_space<vmem>>, %arg4: memref<2x16x128xf32, #tpu.memory_space<vmem>>, %arg5: memref<96x128xbf16, #tpu.memory_space<vmem>>, %arg6: memref<96x128xbf16, #tpu.memory_space<vmem>>) attributes {dimension_semantics = [#tpu.dimension_semantics<parallel>], iteration_bounds = array<i64: 1>, scalar_prefetch = 0 : i64, scratch_operands = 2 : i64, tpu.core_type = #tpu.core_type<tc>, window_params = [{transform_indices = @transform_0, window_bounds = array<i64: 2, 16, 8>}, {pipeline_mode = #tpu.pipeline_mode<synchronous>, transform_indices = @transform_1, window_bounds = array<i64: 2, 3, 128, 128>}, {pipeline_mode = #tpu.pipeline_mode<synchronous>, transform_indices = @transform_2, window_bounds = array<i64: 2, 1, 128>}, {transform_indices = @transform_3, window_bounds = array<i64: 2, 16, 128>}]} {
    %cst = arith.constant 0.000000e+00 : bf16
    %0 = vector.broadcast %cst : bf16 to vector<96x128xbf16>
    %c0 = arith.constant 0 : index
    %c0_0 = arith.constant 0 : index
    %1 = vector.load %arg5[%c0, %c0_0] : memref<96x128xbf16, #tpu.memory_space<vmem>>, vector<96x128xbf16>
    tpu.vector_store %arg5[%c0, %c0_0], %0 {strides = array<i32>} : memref<96x128xbf16, #tpu.memory_space<vmem>>, vector<96x128xbf16>,
    %cst_1 = arith.constant 0.000000e+00 : bf16
    %2 = vector.broadcast %cst_1 : bf16 to vector<16x128xbf16>
    %c0_2 = arith.constant 0 : index
    %c0_3 = arith.constant 0 : index
    %3 = vector.load %arg6[%c0_2, %c0_3] : memref<96x128xbf16, #tpu.memory_space<vmem>>, vector<16x128xbf16>
    tpu.vector_store %arg6[%c0_2, %c0_3], %2 {strides = array<i32>} : memref<96x128xbf16, #tpu.memory_space<vmem>>, vector<16x128xbf16>,
    %cst_4 = arith.constant 0.000000e+00 : bf16
    %4 = vector.broadcast %cst_4 : bf16 to vector<16x128xbf16>
    %c32 = arith.constant 32 : index
    %c0_5 = arith.constant 0 : index
    %5 = vector.load %arg6[%c32, %c0_5] : memref<96x128xbf16, #tpu.memory_space<vmem>>, vector<16x128xbf16>
    tpu.vector_store %arg6[%c32, %c0_5], %4 {strides = array<i32>} : memref<96x128xbf16, #tpu.memory_space<vmem>>, vector<16x128xbf16>,
    %cst_6 = arith.constant 0.000000e+00 : bf16
    %6 = vector.broadcast %cst_6 : bf16 to vector<16x128xbf16>
    %c48 = arith.constant 48 : index
    %c0_7 = arith.constant 0 : index
    %7 = vector.load %arg6[%c48, %c0_7] : memref<96x128xbf16, #tpu.memory_space<vmem>>, vector<16x128xbf16>
    tpu.vector_store %arg6[%c48, %c0_7], %6 {strides = array<i32>} : memref<96x128xbf16, #tpu.memory_space<vmem>>, vector<16x128xbf16>,
    %cst_8 = arith.constant 0.000000e+00 : bf16
    %8 = vector.broadcast %cst_8 : bf16 to vector<16x128xbf16>
    %c80 = arith.constant 80 : index
    %c0_9 = arith.constant 0 : index
    %9 = vector.load %arg6[%c80, %c0_9] : memref<96x128xbf16, #tpu.memory_space<vmem>>, vector<16x128xbf16>
    tpu.vector_store %arg6[%c80, %c0_9], %8 {strides = array<i32>} : memref<96x128xbf16, #tpu.memory_space<vmem>>, vector<16x128xbf16>,
    %c0_10 = arith.constant 0 : index
    %c0_11 = arith.constant 0 : index
    %c0_12 = arith.constant 0 : index
    %10 = vector.load %arg1[%c0_10, %c0_11, %c0_12] : memref<2x16x8xf32, #tpu.memory_space<vmem>>, vector<1x16x8xf32>
    %11 = vector.shape_cast %10 : vector<1x16x8xf32> to vector<16x8xf32>
    %12 = arith.truncf %11 : vector<16x8xf32> to vector<16x8xbf16>
    %c16 = arith.constant 16 : index
    %c0_13 = arith.constant 0 : index
    %13 = vector.load %arg5[%c16, %c0_13] : memref<96x128xbf16, #tpu.memory_space<vmem>>, vector<16x8xbf16>
    tpu.vector_store %arg5[%c16, %c0_13], %12 {strides = array<i32>} : memref<96x128xbf16, #tpu.memory_space<vmem>>, vector<16x8xbf16>,
    %c1 = arith.constant 1 : index
    %c0_14 = arith.constant 0 : index
    %c0_15 = arith.constant 0 : index
    %14 = vector.load %arg1[%c1, %c0_14, %c0_15] : memref<2x16x8xf32, #tpu.memory_space<vmem>>, vector<1x16x8xf32>
    %15 = vector.shape_cast %14 : vector<1x16x8xf32> to vector<16x8xf32>
    %16 = arith.truncf %15 : vector<16x8xf32> to vector<16x8xbf16>
    %c64 = arith.constant 64 : index
    %c0_16 = arith.constant 0 : index
    %17 = vector.load %arg5[%c64, %c0_16] : memref<96x128xbf16, #tpu.memory_space<vmem>>, vector<16x8xbf16>
    tpu.vector_store %arg5[%c64, %c0_16], %16 {strides = array<i32>} : memref<96x128xbf16, #tpu.memory_space<vmem>>, vector<16x8xbf16>,
    %c0_17 = arith.constant 0 : index
    %c0_18 = arith.constant 0 : index
    %18 = vector.load %arg5[%c0_17, %c0_18] : memref<96x128xbf16, #tpu.memory_space<vmem>>, vector<96x128xbf16>
    %c0_19 = arith.constant 0 : index
    %c0_20 = arith.constant 0 : index
    %c0_21 = arith.constant 0 : index
    %c0_22 = arith.constant 0 : index
    %19 = vector.load %arg2[%c0_19, %c0_20, %c0_21, %c0_22] : memref<2x3x128x128xbf16, #tpu.memory_space<vmem>>, vector<1x1x128x128xbf16>
    %20 = vector.shape_cast %19 : vector<1x1x128x128xbf16> to vector<128x128xbf16>
    %cst_23 = arith.constant dense<0.000000e+00> : vector<96x128xf32>
    %21 = tpu.matmul %18, %20, %cst_23 {dimension_numbers = #tpu.dot_dimension_numbers<[1], [0], [0], [1], [0, 0, 1, 1], [], []>} : vector<96x128xbf16>, vector<128x128xbf16>, vector<96x128xf32> -> vector<96x128xf32>
    %c1_i32 = arith.constant 1 : i32
    %22 = tpu.dynamic_rotate %21 by %c1_i32 dim 0 : vector<96x128xf32>, i32 -> vector<96x128xf32>
    %c0_24 = arith.constant 0 : index
    %c1_25 = arith.constant 1 : index
    %c0_26 = arith.constant 0 : index
    %c0_27 = arith.constant 0 : index
    %23 = vector.load %arg2[%c0_24, %c1_25, %c0_26, %c0_27] : memref<2x3x128x128xbf16, #tpu.memory_space<vmem>>, vector<1x1x128x128xbf16>
    %24 = vector.shape_cast %23 : vector<1x1x128x128xbf16> to vector<128x128xbf16>
    %cst_28 = arith.constant dense<0.000000e+00> : vector<96x128xf32>
    %25 = tpu.matmul %18, %24, %cst_28 {dimension_numbers = #tpu.dot_dimension_numbers<[1], [0], [0], [1], [0, 0, 1, 1], [], []>} : vector<96x128xbf16>, vector<128x128xbf16>, vector<96x128xf32> -> vector<96x128xf32>
    %26 = arith.addf %22, %25 : vector<96x128xf32>
    %c0_29 = arith.constant 0 : index
    %c2 = arith.constant 2 : index
    %c0_30 = arith.constant 0 : index
    %c0_31 = arith.constant 0 : index
    %27 = vector.load %arg2[%c0_29, %c2, %c0_30, %c0_31] : memref<2x3x128x128xbf16, #tpu.memory_space<vmem>>, vector<1x1x128x128xbf16>
    %28 = vector.shape_cast %27 : vector<1x1x128x128xbf16> to vector<128x128xbf16>
    %cst_32 = arith.constant dense<0.000000e+00> : vector<96x128xf32>
    %29 = tpu.matmul %18, %28, %cst_32 {dimension_numbers = #tpu.dot_dimension_numbers<[1], [0], [0], [1], [0, 0, 1, 1], [], []>} : vector<96x128xbf16>, vector<128x128xbf16>, vector<96x128xf32> -> vector<96x128xf32>
    %c95_i32 = arith.constant 95 : i32
    %30 = tpu.dynamic_rotate %29 by %c95_i32 dim 0 : vector<96x128xf32>, i32 -> vector<96x128xf32>
    %31 = arith.addf %26, %30 : vector<96x128xf32>
    %c0_33 = arith.constant 0 : index
    %c0_34 = arith.constant 0 : index
    %c0_35 = arith.constant 0 : index
    %32 = vector.load %arg3[%c0_33, %c0_34, %c0_35] : memref<2x1x128xf32, #tpu.memory_space<vmem>>, vector<1x1x128xf32>
    %33 = vector.shape_cast %32 : vector<1x1x128xf32> to vector<1x128xf32>
    %34 = vector.extract_strided_slice %31 {offsets = [16, 0], sizes = [16, 128], strides = [1, 1]} : vector<96x128xf32> to vector<16x128xf32>
    %35 = vector.broadcast %33 : vector<1x128xf32> to vector<16x128xf32>
    %36 = arith.addf %34, %35 : vector<16x128xf32>
    %cst_36 = arith.constant 0.000000e+00 : f32
    %37 = vector.broadcast %cst_36 : f32 to vector<16x128xf32>
    %38 = arith.maximumf %36, %37 : vector<16x128xf32>
    %39 = arith.truncf %38 : vector<16x128xf32> to vector<16x128xbf16>
    %c16_37 = arith.constant 16 : index
    %c0_38 = arith.constant 0 : index
    %40 = vector.load %arg6[%c16_37, %c0_38] : memref<96x128xbf16, #tpu.memory_space<vmem>>, vector<16x128xbf16>
    tpu.vector_store %arg6[%c16_37, %c0_38], %39 {strides = array<i32>} : memref<96x128xbf16, #tpu.memory_space<vmem>>, vector<16x128xbf16>,
    %41 = vector.extract_strided_slice %31 {offsets = [64, 0], sizes = [16, 128], strides = [1, 1]} : vector<96x128xf32> to vector<16x128xf32>
    %42 = vector.broadcast %33 : vector<1x128xf32> to vector<16x128xf32>
    %43 = arith.addf %41, %42 : vector<16x128xf32>
    %cst_39 = arith.constant 0.000000e+00 : f32
    %44 = vector.broadcast %cst_39 : f32 to vector<16x128xf32>
    %45 = arith.maximumf %43, %44 : vector<16x128xf32>
    %46 = arith.truncf %45 : vector<16x128xf32> to vector<16x128xbf16>
    %c64_40 = arith.constant 64 : index
    %c0_41 = arith.constant 0 : index
    %47 = vector.load %arg6[%c64_40, %c0_41] : memref<96x128xbf16, #tpu.memory_space<vmem>>, vector<16x128xbf16>
    tpu.vector_store %arg6[%c64_40, %c0_41], %46 {strides = array<i32>} : memref<96x128xbf16, #tpu.memory_space<vmem>>, vector<16x128xbf16>,
    %c0_42 = arith.constant 0 : index
    %c0_43 = arith.constant 0 : index
    %48 = vector.load %arg6[%c0_42, %c0_43] : memref<96x128xbf16, #tpu.memory_space<vmem>>, vector<96x128xbf16>
    %c1_44 = arith.constant 1 : index
    %c0_45 = arith.constant 0 : index
    %c0_46 = arith.constant 0 : index
    %c0_47 = arith.constant 0 : index
    %49 = vector.load %arg2[%c1_44, %c0_45, %c0_46, %c0_47] : memref<2x3x128x128xbf16, #tpu.memory_space<vmem>>, vector<1x1x128x128xbf16>
    %50 = vector.shape_cast %49 : vector<1x1x128x128xbf16> to vector<128x128xbf16>
    %cst_48 = arith.constant dense<0.000000e+00> : vector<96x128xf32>
    %51 = tpu.matmul %48, %50, %cst_48 {dimension_numbers = #tpu.dot_dimension_numbers<[1], [0], [0], [1], [0, 0, 1, 1], [], []>} : vector<96x128xbf16>, vector<128x128xbf16>, vector<96x128xf32> -> vector<96x128xf32>
    %c1_i32_49 = arith.constant 1 : i32
    %52 = tpu.dynamic_rotate %51 by %c1_i32_49 dim 0 : vector<96x128xf32>, i32 -> vector<96x128xf32>
    %c1_50 = arith.constant 1 : index
    %c1_51 = arith.constant 1 : index
    %c0_52 = arith.constant 0 : index
    %c0_53 = arith.constant 0 : index
    %53 = vector.load %arg2[%c1_50, %c1_51, %c0_52, %c0_53] : memref<2x3x128x128xbf16, #tpu.memory_space<vmem>>, vector<1x1x128x128xbf16>
    %54 = vector.shape_cast %53 : vector<1x1x128x128xbf16> to vector<128x128xbf16>
    %cst_54 = arith.constant dense<0.000000e+00> : vector<96x128xf32>
    %55 = tpu.matmul %48, %54, %cst_54 {dimension_numbers = #tpu.dot_dimension_numbers<[1], [0], [0], [1], [0, 0, 1, 1], [], []>} : vector<96x128xbf16>, vector<128x128xbf16>, vector<96x128xf32> -> vector<96x128xf32>
    %56 = arith.addf %52, %55 : vector<96x128xf32>
    %c1_55 = arith.constant 1 : index
    %c2_56 = arith.constant 2 : index
    %c0_57 = arith.constant 0 : index
    %c0_58 = arith.constant 0 : index
    %57 = vector.load %arg2[%c1_55, %c2_56, %c0_57, %c0_58] : memref<2x3x128x128xbf16, #tpu.memory_space<vmem>>, vector<1x1x128x128xbf16>
    %58 = vector.shape_cast %57 : vector<1x1x128x128xbf16> to vector<128x128xbf16>
    %cst_59 = arith.constant dense<0.000000e+00> : vector<96x128xf32>
    %59 = tpu.matmul %48, %58, %cst_59 {dimension_numbers = #tpu.dot_dimension_numbers<[1], [0], [0], [1], [0, 0, 1, 1], [], []>} : vector<96x128xbf16>, vector<128x128xbf16>, vector<96x128xf32> -> vector<96x128xf32>
    %c95_i32_60 = arith.constant 95 : i32
    %60 = tpu.dynamic_rotate %59 by %c95_i32_60 dim 0 : vector<96x128xf32>, i32 -> vector<96x128xf32>
    %61 = arith.addf %56, %60 : vector<96x128xf32>
    %c1_61 = arith.constant 1 : index
    %c0_62 = arith.constant 0 : index
    %c0_63 = arith.constant 0 : index
    %62 = vector.load %arg3[%c1_61, %c0_62, %c0_63] : memref<2x1x128xf32, #tpu.memory_space<vmem>>, vector<1x1x128xf32>
    %63 = vector.shape_cast %62 : vector<1x1x128xf32> to vector<1x128xf32>
    %64 = vector.extract_strided_slice %61 {offsets = [16, 0], sizes = [16, 128], strides = [1, 1]} : vector<96x128xf32> to vector<16x128xf32>
    %65 = vector.broadcast %63 : vector<1x128xf32> to vector<16x128xf32>
    %66 = arith.addf %64, %65 : vector<16x128xf32>
    %cst_64 = arith.constant 0.000000e+00 : f32
    %67 = vector.broadcast %cst_64 : f32 to vector<16x128xf32>
    %68 = arith.maximumf %66, %67 : vector<16x128xf32>
    %c0_65 = arith.constant 0 : index
    %c0_66 = arith.constant 0 : index
    %c0_67 = arith.constant 0 : index
    %69 = vector.load %arg4[%c0_65, %c0_66, %c0_67] : memref<2x16x128xf32, #tpu.memory_space<vmem>>, vector<1x16x128xf32>
    %70 = vector.shape_cast %69 : vector<1x16x128xf32> to vector<16x128xf32>
    %71 = vector.shape_cast %68 : vector<16x128xf32> to vector<1x16x128xf32>
    tpu.vector_store %arg4[%c0_65, %c0_66, %c0_67], %71 {strides = array<i32>} : memref<2x16x128xf32, #tpu.memory_space<vmem>>, vector<1x16x128xf32>,
    %72 = vector.extract_strided_slice %61 {offsets = [64, 0], sizes = [16, 128], strides = [1, 1]} : vector<96x128xf32> to vector<16x128xf32>
    %73 = vector.broadcast %63 : vector<1x128xf32> to vector<16x128xf32>
    %74 = arith.addf %72, %73 : vector<16x128xf32>
    %cst_68 = arith.constant 0.000000e+00 : f32
    %75 = vector.broadcast %cst_68 : f32 to vector<16x128xf32>
    %76 = arith.maximumf %74, %75 : vector<16x128xf32>
    %c1_69 = arith.constant 1 : index
    %c0_70 = arith.constant 0 : index
    %c0_71 = arith.constant 0 : index
    %77 = vector.load %arg4[%c1_69, %c0_70, %c0_71] : memref<2x16x128xf32, #tpu.memory_space<vmem>>, vector<1x16x128xf32>
    %78 = vector.shape_cast %77 : vector<1x16x128xf32> to vector<16x128xf32>
    %79 = vector.shape_cast %76 : vector<16x128xf32> to vector<1x16x128xf32>
    tpu.vector_store %arg4[%c1_69, %c0_70, %c0_71], %79 {strides = array<i32>} : memref<2x16x128xf32, #tpu.memory_space<vmem>>, vector<1x16x128xf32>,
    return
  }
  func.func @transform_0(%arg0: i32) -> (i32, i32, i32) {
    %c0_i32 = arith.constant 0 : i32
    %c0_i32_0 = arith.constant 0 : i32
    %c0_i32_1 = arith.constant 0 : i32
    return %arg0, %c0_i32, %c0_i32_0 : i32, i32, i32
  }
  func.func @transform_1(%arg0: i32) -> (i32, i32, i32, i32) {
    %c0_i32 = arith.constant 0 : i32
    %c0_i32_0 = arith.constant 0 : i32
    %c0_i32_1 = arith.constant 0 : i32
    %c0_i32_2 = arith.constant 0 : i32
    %c0_i32_3 = arith.constant 0 : i32
    return %c0_i32, %c0_i32_0, %c0_i32_1, %c0_i32_2 : i32, i32, i32, i32
  }
  func.func @transform_2(%arg0: i32) -> (i32, i32, i32) {
    %c0_i32 = arith.constant 0 : i32
    %c0_i32_0 = arith.constant 0 : i32
    %c0_i32_1 = arith.constant 0 : i32
    %c0_i32_2 = arith.constant 0 : i32
    return %c0_i32, %c0_i32_0, %c0_i32_1 : i32, i32, i32
  }
  func.func @transform_3(%arg0: i32) -> (i32, i32, i32) {
    %c0_i32 = arith.constant 0 : i32
    %c0_i32_0 = arith.constant 0 : i32
    %c0_i32_1 = arith.constant 0 : i32
    return %arg0, %c0_i32, %c0_i32_0 : i32, i32, i32
  }
}

</mosaic_0001>

<bundles_post_ra>
// kernel: tpu_custom_call.1
= control target key start
LH: loop header
LB: loop body
LE: loop exit
PB: predicated region body
PF: predicated region fallthrough
CT: control target
= control target key end

     0   :  { %8 = vsyncpa [#allocation5], 0  ;;  %s1354_s0 = inlined_call_operand.vmem [shape: f32[2,16,8], index: 0, kind: input, shape index: {}]   ;;  %s1355_s1 = inlined_call_operand.hbm [shape: bf16[2,3,128,128], index: 1, kind: input, shape index: {}]   ;;  %s1356_s2 = inlined_call_operand.vmem [shape: f32[2,1,128], index: 2, kind: input, shape index: {}]   ;;  %s1357_s3 = inlined_call_operand.hbm [shape: f32[2,16,128], index: 3, kind: output, shape index: {}]  }
   0x1   :  { %9 = vsyncpa [#allocation6], 0  ;;  %s16_s14 = sshll.u32 %s1355_s1, 4  ;;  %s1254_s15 = smov [#allocation4]   ;;  %s17_s14 = int_to_ptr.hbm [resolvable:$true] %s16_s14 }
   0x2   :  { %s18_s16 = sshll.u32 %s1254_s15, 4  ;;  %s1255_s17 = smov 64   ;;  %s19_s16 = int_to_ptr.vmem [resolvable:$true] %s18_s16 }
   0x3   :  { %s1256_s18 = smov 4  }
   0x4   :  { %24 = dma.hbm_to_vmem [thread:$0]  %s17_s14, 6144, %s19_s16, [#allocation5], %s1255_s17, %s1255_s17, %s1256_s18  }
   0x5   :  { %1250 = dma.done.wait [#allocation5], 6144  }
   0x6   :  { %1251 = vsyncadd [#allocation5], 4294961152  ;;  %v1257_v0 = vmov 0   ;;  %v1118_v1 = vld [vmem:[#allocation4 + $0x38] sm:$0xff]  ;;  %v1117_v3 = vld [vmem:[#allocation4 + $0x30] sm:$0xff]  ;;  %vm56_vm0 = vcmask 60416   ;;  %v217_v47 = vlaneseq }
   0x7   :  { %38 = vst [vmem:[#allocation2 + $0x18] sm:$0xf] %v1257_v0  ;;  %v1126_v2 = vld [vmem:[#allocation4 + $0x78] sm:$0xff]  ;;  %1177 = vmatpush.bf16.msra.mxu2 %v1118_v1  ;;  %v1125_v4 = vld [vmem:[#allocation4 + $0x70] sm:$0xff]  ;;  %178 = vmatpush.bf16.msra.mxu0 %v1118_v1  ;;  %v1116_v5 = vld [vmem:[#allocation4 + $0x28] sm:$0xff]  ;;  %s849_s5 = sshll.u32 %s1357_s3, 4  ;;  %s850_s5 = int_to_ptr.hbm [resolvable:$true] %s849_s5 }
   0x8   :  { %39 = vst [vmem:[#allocation2 + $0x1c] sm:$0xf] %v1257_v0  ;;  %1185 = vmatpush.bf16.msra.mxu3 %v1126_v2  ;;  %289 = vmatpush.bf16.msra.mxu1 %v1126_v2  ;;  %v1124_v6 = vld [vmem:[#allocation4 + $0x68] sm:$0xff]  ;;  %v862_v7 = vld [vmem:[%s1354_s0 + $0x10] sm:$0xff]  ;;  %v863_v8 = vld [vmem:[%s1354_s0 + $0x18] sm:$0xff]  ;;  %v1300_v52 = vshrl.u32 %v217_v47, 7 }
   0x9   :  { %32 = vst [vmem:[#allocation2] sm:$0xf] %v1257_v0  ;;  %v1115_v9 = vld [vmem:[#allocation4 + $0x20] sm:$0xff]  ;;  %v62_v11 = vpack.c.bf16 %v862_v7, %v862_v7  ;;  %v63_v12 = vpack.c.bf16 %v863_v8, %v863_v8  ;;  %v1114_v13 = vld [vmem:[#allocation4 + $0x18] sm:$0xff]  ;;  %v1113_v15 = vld [vmem:[#allocation4 + $0x10] sm:$0xff]  ;;  %s1259_s6 = smov 128  }
   0xa   :  { %33 = vst [vmem:[#allocation2 + $0x4] sm:$0xf] %v1257_v0  ;;  %v1123_v10 = vld [vmem:[#allocation4 + $0x60] sm:$0xff]  ;;  %v1122_v14 = vld [vmem:[#allocation4 + $0x58] sm:$0xff]  ;;  %v1121_v16 = vld [vmem:[#allocation4 + $0x50] sm:$0xff]  ;;  %vm219_vm1 = vcmp.lt.s32.totalorder %v1300_v52, 1 }
   0xb   :  { %34 = vst [vmem:[#allocation2 + $0x8] sm:$0xf] %v1257_v0  ;;  %1178 = vmatpush.bf16.msra.mxu2 %v1117_v3  ;;  %179 = vmatpush.bf16.msra.mxu0 %v1117_v3  ;;  %v1112_v17 = vld [vmem:[#allocation4 + $0x8] sm:$0xff]  ;;  %v1111_v19 = vld [vmem:[#allocation4] sm:$0xff]  ;;  %v1134_v21 = vld [vmem:[#allocation4 + $0xb8] sm:$0xff]  ;;  %vm428_vm2 = vcmp.lt.s32.totalorder %v1300_v52, 7 }
   0xc   :  { %35 = vst [vmem:[#allocation2 + $0xc] sm:$0xf] %v1257_v0  ;;  %1186 = vmatpush.bf16.msra.mxu3 %v1125_v4  ;;  %290 = vmatpush.bf16.msra.mxu1 %v1125_v4  ;;  %v1120_v18 = vld [vmem:[#allocation4 + $0x48] sm:$0xff]  ;;  %v1119_v20 = vld [vmem:[#allocation4 + $0x40] sm:$0xff]  ;;  %v1133_v23 = vld [vmem:[#allocation4 + $0xb0] sm:$0xff]  ;;  %s1260_s7 = smov 8  }
   0xd   :  { %36 = vst [vmem:[#allocation2 + $0x10] sm:$0xf] %v1257_v0  ;;  %v1132_v25 = vld [vmem:[#allocation4 + $0xa8] sm:$0xff]  ;;  %v1131_v26 = vld [vmem:[#allocation4 + $0xa0] sm:$0xff]  ;;  %v1130_v27 = vld [vmem:[#allocation4 + $0x98] sm:$0xff] }
   0xe   :  { %37 = vst [vmem:[#allocation2 + $0x14] sm:$0xf] %v1257_v0  ;;  %v1129_v29 = vld [vmem:[#allocation4 + $0x90] sm:$0xff]  ;;  %v52_v30 = vld [vmem:[%s1354_s0] sm:$0xff]  ;;  %v53_v31 = vld [vmem:[%s1354_s0 + $0x8] sm:$0xff] }
   0xf   :  { %40 = vst [vmem:[#allocation2 + $0x20] sm:$0xf] %v1257_v0  ;;  %1179 = vmatpush.bf16.msra.mxu2 %v1116_v5  ;;  %180 = vmatpush.bf16.msra.mxu0 %v1116_v5  ;;  %v1108_v22 = vld [vmem:[#allocation2 + $0x18] sm:$0xff]  ;;  %v54_v32 = vpack.c.bf16 %v52_v30, %v52_v30  ;;  %v55_v33 = vpack.c.bf16 %v53_v31, %v53_v31  ;;  %v1128_v34 = vld [vmem:[#allocation4 + $0x88] sm:$0xff]  ;;  %v1127_v35 = vld [vmem:[#allocation4 + $0x80] sm:$0xff] }
  0x10   :  { %41 = vst [vmem:[#allocation2 + $0x24] sm:$0xf] %v1257_v0  ;;  %1187 = vmatpush.bf16.msra.mxu3 %v1124_v6  ;;  %291 = vmatpush.bf16.msra.mxu1 %v1124_v6  ;;  %v1148_v43 = vld [vmem:[#allocation4 + $0xf8] sm:$0xff]  ;;  %v1147_v49 = vld [vmem:[#allocation4 + $0xf0] sm:$0xff]  ;;  %v1146_v56 = vld [vmem:[#allocation4 + $0xe8] sm:$0xff] }
  0x11   :  { %42 = vst [vmem:[#allocation2 + $0x28] sm:$0xf] %v1257_v0  ;;  %v1105_v24 = vld [vmem:[#allocation2] sm:$0xff]  ;;  %v1164_v48 = vld [vmem:[#allocation4 + $0x178] sm:$0xff]  ;;  %v1163_v51 = vld [vmem:[#allocation4 + $0x170] sm:$0xff] }
  0x12   :  { %43 = vst [vmem:[#allocation2 + $0x2c] sm:$0xf] %v1257_v0  ;;  %v1156_v50 = vld [vmem:[#allocation4 + $0x138] sm:$0xff]  ;;  %v1155_v57 = vld [vmem:[#allocation4 + $0x130] sm:$0xff]  ;;  %v1162_v58 = vld [vmem:[#allocation4 + $0x168] sm:$0xff] }
  0x13   :  { %44 = vst [vmem:[#allocation3] sm:$0xf] %v1257_v0  ;;  %1180 = vmatpush.bf16.msra.mxu2 %v1115_v9  ;;  %181 = vmatpush.bf16.msra.mxu0 %v1115_v9  ;;  %v1145_v1 = vld [vmem:[#allocation4 + $0xe0] sm:$0xff]  ;;  %v1154_v2 = vld [vmem:[#allocation4 + $0x128] sm:$0xff]  ;;  %v1144_v6 = vld [vmem:[#allocation4 + $0xd8] sm:$0xff] }
  0x14   :  { %45 = vst [vmem:[#allocation3 + $0x4] sm:$0xf] %v1257_v0  ;;  %1188 = vmatpush.bf16.msra.mxu3 %v1123_v10  ;;  %292 = vmatpush.bf16.msra.mxu1 %v1123_v10  ;;  %v1161_v3 = vld [vmem:[#allocation4 + $0x160] sm:$0xff]  ;;  %v1160_v10 = vld [vmem:[#allocation4 + $0x158] sm:$0xff] }
  0x15   :  { %46 = vst [vmem:[#allocation3 + $0x10] sm:$0xf] %v1257_v0  ;;  %v1107_v38 = vld [vmem:[#allocation2 + $0x10] sm:$0xff]  ;;  %v1153_v7 = vld [vmem:[#allocation4 + $0x120] sm:$0xff] }
  0x16   :  { %47 = vst [vmem:[#allocation3 + $0x14] sm:$0xf] %v1257_v0  ;;  %v1200_v47 = vld [vmem:[%s1356_s2] ss:$0 sm:$0xff] }
  0x17   :  { %48 = vst [vmem:[#allocation3 + $0x18] sm:$0xf] %v1257_v0  ;;  %1181 = vmatpush.bf16.msra.mxu2 %v1114_v13  ;;  %182 = vmatpush.bf16.msra.mxu0 %v1114_v13 }
  0x18   :  { %49 = vst [vmem:[#allocation3 + $0x1c] sm:$0xf] %v1257_v0  ;;  %1189 = vmatpush.bf16.msra.mxu3 %v1122_v14  ;;  %293 = vmatpush.bf16.msra.mxu1 %v1122_v14 }
  0x19   :  { %50 = vst [vmem:[#allocation3 + $0x28] sm:$0xf] %v1257_v0  ;;  %v1110_v37 = vld [vmem:[#allocation2 + $0x28] sm:$0xff] }
  0x1a   :  { %51 = vst [vmem:[#allocation3 + $0x2c] sm:$0xf] %v1257_v0 }
  0x1b   :  { %64 = vst.msk [vmem:[#allocation2 + $0x20] sm:$0xf] %vm56_vm0, %v62_v11  ;;  %1182 = vmatpush.bf16.msra.mxu2 %v1113_v15  ;;  %183 = vmatpush.bf16.msra.mxu0 %v1113_v15  ;;  %v1152_v15 = vld [vmem:[#allocation4 + $0x118] sm:$0xff] }
  0x1c   :  { %65 = vst.msk [vmem:[#allocation2 + $0x24] sm:$0xf] %vm56_vm0, %v63_v12  ;;  %1190 = vmatpush.bf16.msra.mxu3 %v1121_v16  ;;  %294 = vmatpush.bf16.msra.mxu1 %v1121_v16  ;;  %v1143_v12 = vld [vmem:[#allocation4 + $0xd0] sm:$0xff] }
  0x1d   :  { %57 = vst.msk [vmem:[#allocation2 + $0x8] sm:$0xf] %vm56_vm0, %v54_v32 }
  0x1e   :  { %58 = vst.msk [vmem:[#allocation2 + $0xc] sm:$0xf] %vm56_vm0, %v55_v33 }
  0x1f   :  { %1183 = vmatpush.bf16.msra.mxu2 %v1112_v17  ;;  %184 = vmatpush.bf16.msra.mxu0 %v1112_v17  ;;  %v1159_v17 = vld [vmem:[#allocation4 + $0x150] sm:$0xff] }
  0x20   :  { %1191 = vmatpush.bf16.msra.mxu3 %v1120_v18  ;;  %295 = vmatpush.bf16.msra.mxu1 %v1120_v18  ;;  %v1142_v18 = vld [vmem:[#allocation4 + $0xc8] sm:$0xff] }
  0x23   :  { %1184 = vmatpush.bf16.msra.mxu2 %v1111_v19  ;;  %185 = vmatpush.bf16.msra.mxu0 %v1111_v19  ;;  %v1109_v28 = vld [vmem:[#allocation2 + $0x20] sm:$0xff]  ;;  %v1151_v19 = vld [vmem:[#allocation4 + $0x110] sm:$0xff] }
  0x24   :  { %1192 = vmatpush.bf16.msra.mxu3 %v1119_v20  ;;  %296 = vmatpush.bf16.msra.mxu1 %v1119_v20  ;;  %v1158_v20 = vld [vmem:[#allocation4 + $0x148] sm:$0xff] }
  0x25   :  { %v1106_v36 = vld [vmem:[#allocation2 + $0x8] sm:$0xff] }
  0x26   :  { %198 = vmatmul.bf16.vlgmr.msra.gmra.mxu2 %v1108_v22  ;;  %186 = vmatmul.bf16.vlgmr.msra.gmra.mxu0 %v1105_v24 }
  0x27   :  { %389 = vmatpush.bf16.msrb.mxu2 %v1134_v21  ;;  %308 = vmatmul.bf16.vlgmr.msra.gmra.mxu3 %v1108_v22 }
  0x28   :  { %297 = vmatmul.bf16.vlgmr.msra.gmra.mxu1 %v1105_v24  ;;  %570 = vmatpush.bf16.msrb.mxu3 %v1148_v43 }
  0x29   :  { %778 = vmatpush.bf16.msrb.mxu1 %v1164_v48  ;;  %678 = vmatpush.bf16.msrb.mxu0 %v1156_v50 }
  0x2b   :  { %390 = vmatpush.bf16.msrb.mxu2 %v1133_v23 }
  0x2c   :  { %571 = vmatpush.bf16.msrb.mxu3 %v1147_v49 }
  0x2d   :  { %779 = vmatpush.bf16.msrb.mxu1 %v1163_v51  ;;  %679 = vmatpush.bf16.msrb.mxu0 %v1155_v57 }
  0x2f   :  { %391 = vmatpush.bf16.msrb.mxu2 %v1132_v25 }
  0x30   :  { %572 = vmatpush.bf16.msrb.mxu3 %v1146_v56 }
  0x31   :  { %780 = vmatpush.bf16.msrb.mxu1 %v1162_v58  ;;  %680 = vmatpush.bf16.msrb.mxu0 %v1154_v2 }
  0x33   :  { %392 = vmatpush.bf16.msrb.mxu2 %v1131_v26  ;;  %v1150_v26 = vld [vmem:[#allocation4 + $0x108] sm:$0xff] }
  0x34   :  { %573 = vmatpush.bf16.msrb.mxu3 %v1145_v1  ;;  %v1137_v1 = vld [vmem:[#allocation3 + $0x10] sm:$0xff] }
  0x35   :  { %781 = vmatpush.bf16.msrb.mxu1 %v1161_v3  ;;  %681 = vmatpush.bf16.msrb.mxu0 %v1153_v7 }
  0x36   :  { %202 = vmatmul.bf16.gmra.mxu2 %v1109_v28  ;;  %190 = vmatmul.bf16.gmra.mxu0 %v1106_v36 }
  0x37   :  { %393 = vmatpush.bf16.msrb.mxu2 %v1130_v27  ;;  %311 = vmatmul.bf16.gmra.mxu3 %v1109_v28  ;;  %v1135_v27 = vld [vmem:[#allocation3] sm:$0xff] }
  0x38   :  { %300 = vmatmul.bf16.gmra.mxu1 %v1106_v36  ;;  %574 = vmatpush.bf16.msrb.mxu3 %v1144_v6 }
  0x39   :  { %782 = vmatpush.bf16.msrb.mxu1 %v1160_v10  ;;  %682 = vmatpush.bf16.msrb.mxu0 %v1152_v15  ;;  %v1138_v10 = vld [vmem:[#allocation3 + $0x18] sm:$0xff] }
  0x3b   :  { %394 = vmatpush.bf16.msrb.mxu2 %v1129_v29  ;;  %v1149_v29 = vld [vmem:[#allocation4 + $0x100] sm:$0xff] }
  0x3c   :  { %575 = vmatpush.bf16.msrb.mxu3 %v1143_v12 }
  0x3d   :  { %783 = vmatpush.bf16.msrb.mxu1 %v1159_v17  ;;  %683 = vmatpush.bf16.msrb.mxu0 %v1151_v19 }
  0x3f   :  { %395 = vmatpush.bf16.msrb.mxu2 %v1128_v34 }
  0x40   :  { %576 = vmatpush.bf16.msrb.mxu3 %v1142_v18 }
  0x41   :  { %784 = vmatpush.bf16.msrb.mxu1 %v1158_v20  ;;  %684 = vmatpush.bf16.msrb.mxu0 %v1150_v26 }
  0x43   :  { %396 = vmatpush.bf16.msrb.mxu2 %v1127_v35 }
  0x45   :  { %685 = vmatpush.bf16.msrb.mxu0 %v1149_v29 }
  0x46   :  { %207 = vmatmul.bf16.gmra.mxu2 %v1110_v37  ;;  %195 = vmatmul.bf16.gmra.mxu0 %v1107_v38 }
  0x47   :  { %316 = vmatmul.bf16.gmra.mxu3 %v1110_v37 }
  0x48   :  { %305 = vmatmul.bf16.gmra.mxu1 %v1107_v38 }
  0x56   :  { %397 = vmatmul.bf16.vlgmr.msrb.gmra.mxu2 %v1105_v24  ;;  %686 = vmatmul.bf16.vlgmr.msrb.gmra.mxu0 %v1135_v27 }
  0x66   :  { %400 = vmatmul.bf16.gmra.mxu2 %v1106_v36 }
  0x76   :  { %405 = vmatmul.bf16.gmra.mxu2 %v1107_v38 }
  0x86   :  { %409 = vmatmul.bf16.gmra.mxu2 %v1108_v22  ;;  %v1141_v22 = vld [vmem:[#allocation4 + $0xc0] sm:$0xff] }
  0x87   :  { %577 = vmatpush.bf16.msrb.mxu3 %v1141_v22 }
  0x8a   :  { %578 = vmatmul.bf16.vlgmr.msrb.gmra.mxu3 %v1135_v27 }
  0x96   :  { %412 = vmatmul.bf16.gmra.mxu2 %v1109_v28  ;;  %v1157_v28 = vld [vmem:[#allocation4 + $0x140] sm:$0xff] }
  0x97   :  { %785 = vmatpush.bf16.msrb.mxu1 %v1157_v28 }
  0x9a   :  { %786 = vmatmul.bf16.vlgmr.msrb.gmra.mxu1 %v1135_v27 }
  0xa3   :  { %v187_v39 = vpop.f32.mrf.mxu0 }
  0xa5   :  { %v298_v40 = vpop.f32.mrf.mxu1 }
  0xa6   :  { %417 = vmatmul.bf16.gmra.mxu2 %v1110_v37 }
  0xa9   :  { %v199_v41 = vpop.f32.mrf.mxu2 }
  0xaa   :  { %v309_v42 = vpop.f32.mrf.mxu3 }
  0xab   :  { %v1302_v53 = vpop.f32.mrf.mxu0 }
  0xac   :  { %v211_v36 = vrot.slane %v1302_v53, 7 }
  0xad   :  { %v299_v44 = vpop.f32.mrf.mxu1 }
  0xb1   :  { %v200_v45 = vpop.f32.mrf.mxu2 }
  0xb2   :  { %v310_v46 = vpop.f32.mrf.mxu3  ;;  %v214_v59 = vrot.slane %v200_v45, 7 }
  0xb3   :  { %v191_v5 = vpop.f32.mrf.mxu0 }
  0xb4   :  { %v212_v37 = vrot.slane %v191_v5, 7 }
  0xb5   :  { %v301_v14 = vpop.f32.mrf.mxu1 }
  0xb6   :  { %v223_v40 = vsel %vm219_vm1, %v211_v36, %v212_v37  ;;  %v1201_v36 = vld [vmem:[%s1356_s2 + $0x1] ss:$0 sm:$0xff]  ;;  %s1258_s2 = smov [#allocation7]  }
  0xb7   :  { %v320_v44 = vadd.f32 %v301_v14, %v223_v40  ;;  %s847_s29 = sshll.u32 %s1258_s2, 4  ;;  %s848_s29 = int_to_ptr.vmem [resolvable:$true] %s847_s29 }
  0xb9   :  { %v203_v54 = vpop.f32.mrf.mxu2 }
  0xba   :  { %v312_v55 = vpop.f32.mrf.mxu3  ;;  %v215_v60 = vrot.slane %v203_v54, 7 }
  0xbb   :  { %v193_v16 = vpop.f32.mrf.mxu0 }
  0xbc   :  { %v221_v61 = vsel %vm219_vm1, %v214_v59, %v215_v60  ;;  %v213_v42 = vrot.slane %v193_v16, 7 }
  0xbd   :  { %v1307_v62 = vadd.f32 %v312_v55, %v221_v61  ;;  %v303_v24 = vpop.f32.mrf.mxu1 }
  0xbe   :  { %v222_v45 = vsel %vm219_vm1, %v212_v37, %v213_v42 }
  0xbf   :  { %v321_v50 = vadd.f32 %v303_v24, %v222_v45 }
  0xc1   :  { %v205_v63 = vpop.f32.mrf.mxu2 }
  0xc2   :  { %v314_v0 = vpop.f32.mrf.mxu3  ;;  %v216_v4 = vrot.slane %v205_v63, 7 }
  0xc3   :  { %v196_v25 = vpop.f32.mrf.mxu0 }
  0xc4   :  { %v220_v8 = vsel %vm219_vm1, %v215_v60, %v216_v4 }
  0xc5   :  { %v1311_v9 = vadd.f32 %v314_v0, %v220_v8  ;;  %v306_v31 = vpop.f32.mrf.mxu1 }
  0xc9   :  { %v208_v11 = vpop.f32.mrf.mxu2 }
  0xca   :  { %v317_v13 = vpop.f32.mrf.mxu3 }
  0xcb   :  { %v197_v32 = vpop.f32.mrf.mxu0 }
  0xcd   :  { %v307_v34 = vpop.f32.mrf.mxu1 }
  0xd1   :  { %v209_v21 = vpop.f32.mrf.mxu2 }
  0xd2   :  { %v318_v23 = vpop.f32.mrf.mxu3 }
  0xd9   :  { %v398_v30 = vpop.f32.mrf.mxu2 }
  0xe1   :  { %v399_v33 = vpop.f32.mrf.mxu2 }
  0xe9   :  { %v401_v35 = vpop.f32.mrf.mxu2 }
  0xea   :  { %v422_v41 = vrot.slane %v401_v35, 1 }
  0xf1   :  { %v403_v38 = vpop.f32.mrf.mxu2 }
  0xf2   :  { %v423_v39 = vrot.slane %v403_v38, 1 }
  0xf4   :  { %v432_v43 = vsel %vm428_vm2, %v422_v41, %v423_v39 }
  0xf5   :  { %v433_v46 = vadd.f32 %v432_v43, %v320_v44 }
  0xf7   :  { %v441_v53 = vadd.f32 %v1200_v47, %v433_v46 }
  0xf9   :  { %v406_v48 = vpop.f32.mrf.mxu2  ;;  %v443_v56 = vmax.f32 %v441_v53, 0.0 }
  0xfa   :  { %v424_v49 = vrot.slane %v406_v48, 1 }
  0xfc   :  { %v431_v51 = vsel %vm428_vm2, %v423_v39, %v424_v49 }
  0xfd   :  { %v434_v54 = vadd.f32 %v431_v51, %v321_v50 }
  0xff   :  { %v442_v55 = vadd.f32 %v1200_v47, %v434_v54 }
 0x101   :  { %v444_v57 = vmax.f32 %v442_v55, 0.0  ;;  %v408_v58 = vpop.f32.mrf.mxu2 }
 0x103   :  { %v1168_v59 = vpack.c.bf16 %v444_v57, %v443_v56 }
 0x105   :  { %1175 = vst [vmem:[#allocation3 + $0x8] sm:$0xff] %v1168_v59  }
 0x109   :  { %v410_v60 = vpop.f32.mrf.mxu2 }
 0x10c   :  { %v1136_v61 = vld [vmem:[#allocation3 + $0x8] sm:$0xff] }
 0x10d   :  { %582 = vmatmul.bf16.gmra.mxu3 %v1136_v61  ;;  %689 = vmatmul.bf16.gmra.mxu0 %v1136_v61  ;;  %v579_v21 = vpop.f32.mrf.mxu3 }
 0x10e   :  { %789 = vmatmul.bf16.gmra.mxu1 %v1136_v61 }
 0x111   :  { %v411_v63 = vpop.f32.mrf.mxu2 }
 0x115   :  { %v580_v24 = vpop.f32.mrf.mxu3 }
 0x116   :  { %v603_v28 = vrot.slane %v580_v24, 7 }
 0x117   :  { %v787_v20 = vpop.f32.mrf.mxu1 }
 0x119   :  { %v413_v0 = vpop.f32.mrf.mxu2 }
 0x11a   :  { %v425_v4 = vrot.slane %v413_v0, 1 }
 0x11d   :  { %587 = vmatmul.bf16.gmra.mxu3 %v1137_v1  ;;  %694 = vmatmul.bf16.gmra.mxu0 %v1137_v1 }
 0x11e   :  { %794 = vmatmul.bf16.gmra.mxu1 %v1137_v1 }
 0x11f   :  { %v788_v22 = vpop.f32.mrf.mxu1 }
 0x121   :  { %v415_v2 = vpop.f32.mrf.mxu2 }
 0x122   :  { %v426_v3 = vrot.slane %v415_v2, 1 }
 0x124   :  { %v430_v5 = vsel %vm428_vm2, %v425_v4, %v426_v3 }
 0x125   :  { %v435_v6 = vadd.f32 %v430_v5, %v1307_v62  ;;  %v1140_v62 = vld [vmem:[#allocation3 + $0x28] sm:$0xff] }
 0x127   :  { %v449_v12 = vadd.f32 %v1200_v47, %v435_v6 }
 0x129   :  { %v418_v7 = vpop.f32.mrf.mxu2  ;;  %v451_v15 = vmax.f32 %v449_v12, 0.0 }
 0x12a   :  { %v427_v8 = vrot.slane %v418_v7, 1 }
 0x12c   :  { %v429_v11 = vsel %vm428_vm2, %v426_v3, %v427_v8 }
 0x12d   :  { %v436_v13 = vadd.f32 %v429_v11, %v1311_v9  ;;  %590 = vmatmul.bf16.gmra.mxu3 %v1138_v10  ;;  %697 = vmatmul.bf16.gmra.mxu0 %v1138_v10  ;;  %v687_v9 = vpop.f32.mrf.mxu0 }
 0x12e   :  { %798 = vmatmul.bf16.gmra.mxu1 %v1138_v10 }
 0x12f   :  { %v450_v14 = vadd.f32 %v1200_v47, %v436_v13 }
 0x131   :  { %v452_v16 = vmax.f32 %v450_v14, 0.0  ;;  %v420_v17 = vpop.f32.mrf.mxu2 }
 0x133   :  { %v1173_v18 = vpack.c.bf16 %v452_v16, %v451_v15 }
 0x135   :  { %1176 = vst [vmem:[#allocation3 + $0x20] sm:$0xff] %v1173_v18   ;;  %v688_v23 = vpop.f32.mrf.mxu0 }
 0x13c   :  { %v1139_v19 = vld [vmem:[#allocation3 + $0x20] sm:$0xff] }
 0x13d   :  { %594 = vmatmul.bf16.gmra.mxu3 %v1139_v19  ;;  %700 = vmatmul.bf16.gmra.mxu0 %v1139_v19 }
 0x13e   :  { %801 = vmatmul.bf16.gmra.mxu1 %v1139_v19 }
 0x14d   :  { %599 = vmatmul.bf16.gmra.mxu3 %v1140_v62  ;;  %705 = vmatmul.bf16.gmra.mxu0 %v1140_v62 }
 0x14e   :  { %806 = vmatmul.bf16.gmra.mxu1 %v1140_v62 }
 0x18a   :  { %v690_v25 = vpop.f32.mrf.mxu0 }
 0x18b   :  { %v790_v26 = vpop.f32.mrf.mxu1 }
 0x18c   :  { %v811_v33 = vrot.slane %v790_v26, 1 }
 0x190   :  { %v583_v27 = vpop.f32.mrf.mxu3 }
 0x191   :  { %v604_v29 = vrot.slane %v583_v27, 7 }
 0x192   :  { %v692_v30 = vpop.f32.mrf.mxu0 }
 0x193   :  { %v612_v31 = vsel %vm219_vm1, %v603_v28, %v604_v29  ;;  %v792_v32 = vpop.f32.mrf.mxu1 }
 0x194   :  { %v709_v34 = vadd.f32 %v690_v25, %v612_v31  ;;  %v812_v35 = vrot.slane %v792_v32, 1 }
 0x196   :  { %v820_v37 = vsel %vm428_vm2, %v811_v33, %v812_v35 }
 0x197   :  { %v821_v38 = vadd.f32 %v820_v37, %v709_v34 }
 0x198   :  { %v585_v39 = vpop.f32.mrf.mxu3 }
 0x199   :  { %v830_v40 = vadd.f32 %v1201_v36, %v821_v38  ;;  %v605_v41 = vrot.slane %v585_v39, 7 }
 0x19a   :  { %v695_v42 = vpop.f32.mrf.mxu0 }
 0x19b   :  { %v832_v43 = vmax.f32 %v830_v40, 0.0  ;;  %v611_v44 = vsel %vm219_vm1, %v604_v29, %v605_v41  ;;  %v795_v45 = vpop.f32.mrf.mxu1 }
 0x19c   :  { %v710_v46 = vadd.f32 %v692_v30, %v611_v44  ;;  %v813_v47 = vrot.slane %v795_v45, 1 }
 0x19d   :  { %834 = vst [vmem:[#allocation7] sm:$0xff] %v832_v43 }
 0x19e   :  { %v819_v48 = vsel %vm428_vm2, %v812_v35, %v813_v47 }
 0x19f   :  { %v822_v49 = vadd.f32 %v819_v48, %v710_v46 }
 0x1a0   :  { %v588_v50 = vpop.f32.mrf.mxu3 }
 0x1a1   :  { %v831_v51 = vadd.f32 %v1201_v36, %v822_v49 }
 0x1a2   :  { %v696_v53 = vpop.f32.mrf.mxu0 }
 0x1a3   :  { %v833_v54 = vmax.f32 %v831_v51, 0.0  ;;  %v797_v55 = vpop.f32.mrf.mxu1 }
 0x1a5   :  { %835 = vst [vmem:[#allocation7 + $0x8] sm:$0xff] %v833_v54 }
 0x1a8   :  { %v589_v56 = vpop.f32.mrf.mxu3 }
 0x1aa   :  { %v698_v57 = vpop.f32.mrf.mxu0 }
 0x1ab   :  { %v799_v58 = vpop.f32.mrf.mxu1 }
 0x1b0   :  { %v591_v59 = vpop.f32.mrf.mxu3 }
 0x1b2   :  { %v699_v60 = vpop.f32.mrf.mxu0 }
 0x1b3   :  { %v800_v61 = vpop.f32.mrf.mxu1 }
 0x1b8   :  { %v592_v63 = vpop.f32.mrf.mxu3 }
 0x1b9   :  { %v606_v3 = vrot.slane %v592_v63, 7 }
 0x1ba   :  { %v701_v0 = vpop.f32.mrf.mxu0 }
 0x1bb   :  { %v802_v1 = vpop.f32.mrf.mxu1 }
 0x1bc   :  { %v814_v8 = vrot.slane %v802_v1, 1 }
 0x1c0   :  { %v595_v2 = vpop.f32.mrf.mxu3 }
 0x1c1   :  { %v607_v4 = vrot.slane %v595_v2, 7 }
 0x1c2   :  { %v703_v5 = vpop.f32.mrf.mxu0 }
 0x1c3   :  { %v610_v6 = vsel %vm219_vm1, %v606_v3, %v607_v4  ;;  %v804_v7 = vpop.f32.mrf.mxu1 }
 0x1c4   :  { %v711_v10 = vadd.f32 %v701_v0, %v610_v6  ;;  %v815_v11 = vrot.slane %v804_v7, 1 }
 0x1c6   :  { %v818_v12 = vsel %vm428_vm2, %v814_v8, %v815_v11 }
 0x1c7   :  { %v823_v13 = vadd.f32 %v818_v12, %v711_v10 }
 0x1c8   :  { %v597_v14 = vpop.f32.mrf.mxu3 }
 0x1c9   :  { %v836_v15 = vadd.f32 %v1201_v36, %v823_v13  ;;  %v608_v16 = vrot.slane %v597_v14, 7 }
 0x1ca   :  { %v706_v17 = vpop.f32.mrf.mxu0 }
 0x1cb   :  { %v838_v18 = vmax.f32 %v836_v15, 0.0  ;;  %v609_v19 = vsel %vm219_vm1, %v607_v4, %v608_v16  ;;  %v807_v62 = vpop.f32.mrf.mxu1 }
 0x1cc   :  { %v712_v20 = vadd.f32 %v703_v5, %v609_v19  ;;  %v816_v21 = vrot.slane %v807_v62, 1 }
 0x1cd   :  { %841 = vst [vmem:[#allocation7 + $0x10] sm:$0xff] %v838_v18 }
 0x1ce   :  { %v817_v9 = vsel %vm428_vm2, %v815_v11, %v816_v21 }
 0x1cf   :  { %v824_v22 = vadd.f32 %v817_v9, %v712_v20 }
 0x1d0   :  { %v600_v23 = vpop.f32.mrf.mxu3 }
 0x1d1   :  { %v837_v24 = vadd.f32 %v1201_v36, %v824_v22 }
 0x1d2   :  { %v707_v25 = vpop.f32.mrf.mxu0 }
 0x1d3   :  { %v839_v26 = vmax.f32 %v837_v24, 0.0  ;;  %v809_v27 = vpop.f32.mrf.mxu1 }
 0x1d5   :  { %842 = vst [vmem:[#allocation7 + $0x18] sm:$0xff] %v839_v26 }
 0x1d6   :  { %855 = dma.vmem_to_hbm [thread:$0]  %s848_s29, 512, %s850_s5, [#allocation6], %s1259_s6, %s1259_s6, %s1260_s7  }
 0x1d8   :  { %v601_v52 = vpop.f32.mrf.mxu3 }
 0x1d9   :  { %1252 = dma.done.wait [#allocation6], 512  }
 0x1da   :  { %1253 = vsyncadd [#allocation6], 4294966784 }
 0x1db   :  { %860 = vsyncpa [#allocation5], 1 }
 0x1dc   :  { %861 = vsyncpa [#allocation6], 1 }

</bundles_post_ra>
